<compile_context>
chip_gen: v5e
topology: v5e:2x2
jax: 0.10.0
libtpu: 0.0.40
codegen_flags: <defaults>
</compile_context>

<pallas_src>
import jax
import jax.numpy as jnp
from jax.experimental import pallas as pl
from jax.experimental.pallas import tpu as pltpu

# pair indices (static, from the module)
PAIR_I = (0, 0, 0, 1, 1, 2)
PAIR_J = (1, 2, 3, 2, 3, 3)


def _beta_objective_kernel(beta_ref, nullv_ref, distw_ref, out_ref):
    beta = beta_ref[...]      # (4, bt)   beta[k, b]
    nv = nullv_ref[...]       # (4, 12, bt)  nv[k, n, b] == nullv[b, k, n]

    # base_c flattened coords on sublanes: bc[n, b] = sum_k beta[b, k] * nullv[b, k, n]
    # 4 dense (12, bt) FMAs with a sublane-broadcast of each beta row.
    bc = (nv[0] * beta[0:1, :]
          + nv[1] * beta[1:2, :]
          + nv[2] * beta[2:3, :]
          + nv[3] * beta[3:4, :])                      # (12, bt)

    # Extract the 12 coordinate rows once (point p, coord d -> row 3p + d).
    bcr = [bc[r:r + 1, :] for r in range(12)]          # 12 x (1, bt)

    # Pairwise camera-frame distances: pure element-wise, no sublane reduce.
    rows = []
    for i, j in zip(PAIR_I, PAIR_J):
        d0 = bcr[3 * i + 0] - bcr[3 * j + 0]
        d1 = bcr[3 * i + 1] - bcr[3 * j + 1]
        d2 = bcr[3 * i + 2] - bcr[3 * j + 2]
        rows.append(jnp.sqrt(d0 * d0 + d1 * d1 + d2 * d2))   # (1, bt)
    dist_c = jnp.concatenate(rows, axis=0)              # (6, bt)

    # Single dense (6, bt) store.
    out_ref[...] = distw_ref[...] - dist_c


def beta_objective(beta, base_w, nullv, *, block_b=2048):
    """beta:(B,4) base_w:(B,4,3) nullv:(B,4,12)  ->  (B,6)  == dist_w - dist_c."""
    B = beta.shape[0]
    assert beta.shape == (B, 4) and nullv.shape == (B, 4, 12) and base_w.shape == (B, 4, 3)

    beta = beta.astype(jnp.float32)
    base_w = base_w.astype(jnp.float32)
    nullv = nullv.astype(jnp.float32)

    # dist_w is independent of beta: hoist out of the kernel (saves the base_w DMA).
    i_idx = jnp.array(PAIR_I)
    j_idx = jnp.array(PAIR_J)
    dw = base_w[:, i_idx, :] - base_w[:, j_idx, :]            # (B, 6, 3)
    dist_w = jnp.sqrt(jnp.sum(dw * dw, axis=-1))              # (B, 6)

    # Batch tile size: multiple of 128 lanes, capped by block_b.
    block_b = max(128, (int(block_b) // 128) * 128)
    bt = min(block_b, pl.cdiv(B, 128) * 128)
    Bp = pl.cdiv(B, bt) * bt
    pad = Bp - B

    # Lane-major (batch-last) layouts, zero-padded to Bp (padding lanes give
    # sqrt(0) = 0 and are sliced off, so no NaNs / garbage leak out).
    beta_t = jnp.pad(beta, ((0, pad), (0, 0))).T                                   # (4, Bp)
    nullv_t = jnp.pad(jnp.transpose(nullv, (1, 2, 0)), ((0, 0), (0, 0), (0, pad)))  # (4, 12, Bp)
    distw_t = jnp.pad(dist_w, ((0, pad), (0, 0))).T                                 # (6, Bp)

    out_t = pl.pallas_call(
        _beta_objective_kernel,
        out_shape=jax.ShapeDtypeStruct((6, Bp), jnp.float32),
        grid=(Bp // bt,),
        in_specs=[
            pl.BlockSpec((4, bt), lambda b: (0, b)),
            pl.BlockSpec((4, 12, bt), lambda b: (0, 0, b)),
            pl.BlockSpec((6, bt), lambda b: (0, b)),
        ],
        out_specs=pl.BlockSpec((6, bt), lambda b: (0, b)),
        compiler_params=pltpu.CompilerParams(
            dimension_semantics=("parallel",)),
    )(beta_t, nullv_t, distw_t)

    return out_t.T[:B]                                        # (B, 6)


def beta_objective_ref(beta, base_w, nullv):
    """Pure-JAX reference mirroring the PyTorch forward."""
    base_c = jnp.einsum("bkn,bk->bn", nullv, beta).reshape(-1, 4, 3)
    i = jnp.array(PAIR_I)
    j = jnp.array(PAIR_J)
    dist_c = jnp.linalg.norm(base_c[:, i, :] - base_c[:, j, :], axis=-1)
    dist_w = jnp.linalg.norm(base_w[:, i, :] - base_w[:, j, :], axis=-1)
    return dist_w - dist_c


if __name__ == "__main__":
    key = jax.random.PRNGKey(0)

    # (B, block_b): small single-tile case + a multi-tile case exercising the
    # grid and the batch padding path.
    for B, blk in ((8, 2048), (200, 128)):
        k_beta, k_w, k_null, key = jax.random.split(key, 4)
        beta = jax.random.normal(k_beta, (B, 4), dtype=jnp.float32)
        base_w = jax.random.normal(k_w, (B, 4, 3), dtype=jnp.float32)
        nullv = jax.random.normal(k_null, (B, 4, 12), dtype=jnp.float32)

        out = beta_objective(beta, base_w, nullv, block_b=blk)
        out = jax.block_until_ready(out)

        ref = beta_objective_ref(beta, base_w, nullv)
        assert out.shape == (B, 6)
        assert jnp.allclose(out, ref, atol=1e-5, rtol=1e-5), "mismatch vs reference"

    print("KERNEL_OK")
</pallas_src>

<mosaic_0001>
module attributes {stable_mosaic.version = 11 : i64} {
  func.func @_beta_objective_kernel(%arg0: i32, %arg1: memref<4x128xf32, #tpu.memory_space<vmem>>, %arg2: memref<4x12x128xf32, #tpu.memory_space<vmem>>, %arg3: memref<6x128xf32, #tpu.memory_space<vmem>>, %arg4: memref<6x128xf32, #tpu.memory_space<vmem>>) attributes {dimension_semantics = [#tpu.dimension_semantics<parallel>], iteration_bounds = array<i64: 1>, scalar_prefetch = 0 : i64, scratch_operands = 0 : i64, tpu.core_type = #tpu.core_type<tc>, window_params = [{transform_indices = @transform_0, window_bounds = array<i64: 4, 128>}, {transform_indices = @transform_1, window_bounds = array<i64: 4, 12, 128>}, {transform_indices = @transform_2, window_bounds = array<i64: 6, 128>}, {transform_indices = @transform_3, window_bounds = array<i64: 6, 128>}]} {
    %c0 = arith.constant 0 : index
    %c0_0 = arith.constant 0 : index
    %0 = vector.load %arg1[%c0, %c0_0] : memref<4x128xf32, #tpu.memory_space<vmem>>, vector<4x128xf32>
    %c0_1 = arith.constant 0 : index
    %c0_2 = arith.constant 0 : index
    %c0_3 = arith.constant 0 : index
    %1 = vector.load %arg2[%c0_1, %c0_2, %c0_3] : memref<4x12x128xf32, #tpu.memory_space<vmem>>, vector<4x12x128xf32>
    %2 = vector.extract_strided_slice %1 {offsets = [0, 0, 0], sizes = [1, 12, 128], strides = [1, 1, 1]} : vector<4x12x128xf32> to vector<1x12x128xf32>
    %3 = vector.shape_cast %2 : vector<1x12x128xf32> to vector<12x128xf32>
    %4 = vector.extract_strided_slice %0 {offsets = [0, 0], sizes = [1, 128], strides = [1, 1]} : vector<4x128xf32> to vector<1x128xf32>
    %5 = vector.broadcast %4 : vector<1x128xf32> to vector<12x128xf32>
    %6 = arith.mulf %3, %5 : vector<12x128xf32>
    %7 = vector.extract_strided_slice %1 {offsets = [1, 0, 0], sizes = [1, 12, 128], strides = [1, 1, 1]} : vector<4x12x128xf32> to vector<1x12x128xf32>
    %8 = vector.shape_cast %7 : vector<1x12x128xf32> to vector<12x128xf32>
    %9 = vector.extract_strided_slice %0 {offsets = [1, 0], sizes = [1, 128], strides = [1, 1]} : vector<4x128xf32> to vector<1x128xf32>
    %10 = vector.broadcast %9 : vector<1x128xf32> to vector<12x128xf32>
    %11 = arith.mulf %8, %10 : vector<12x128xf32>
    %12 = arith.addf %6, %11 : vector<12x128xf32>
    %13 = vector.extract_strided_slice %1 {offsets = [2, 0, 0], sizes = [1, 12, 128], strides = [1, 1, 1]} : vector<4x12x128xf32> to vector<1x12x128xf32>
    %14 = vector.shape_cast %13 : vector<1x12x128xf32> to vector<12x128xf32>
    %15 = vector.extract_strided_slice %0 {offsets = [2, 0], sizes = [1, 128], strides = [1, 1]} : vector<4x128xf32> to vector<1x128xf32>
    %16 = vector.broadcast %15 : vector<1x128xf32> to vector<12x128xf32>
    %17 = arith.mulf %14, %16 : vector<12x128xf32>
    %18 = arith.addf %12, %17 : vector<12x128xf32>
    %19 = vector.extract_strided_slice %1 {offsets = [3, 0, 0], sizes = [1, 12, 128], strides = [1, 1, 1]} : vector<4x12x128xf32> to vector<1x12x128xf32>
    %20 = vector.shape_cast %19 : vector<1x12x128xf32> to vector<12x128xf32>
    %21 = vector.extract_strided_slice %0 {offsets = [3, 0], sizes = [1, 128], strides = [1, 1]} : vector<4x128xf32> to vector<1x128xf32>
    %22 = vector.broadcast %21 : vector<1x128xf32> to vector<12x128xf32>
    %23 = arith.mulf %20, %22 : vector<12x128xf32>
    %24 = arith.addf %18, %23 : vector<12x128xf32>
    %25 = vector.extract_strided_slice %24 {offsets = [0, 0], sizes = [1, 128], strides = [1, 1]} : vector<12x128xf32> to vector<1x128xf32>
    %26 = vector.extract_strided_slice %24 {offsets = [1, 0], sizes = [1, 128], strides = [1, 1]} : vector<12x128xf32> to vector<1x128xf32>
    %27 = vector.extract_strided_slice %24 {offsets = [2, 0], sizes = [1, 128], strides = [1, 1]} : vector<12x128xf32> to vector<1x128xf32>
    %28 = vector.extract_strided_slice %24 {offsets = [3, 0], sizes = [1, 128], strides = [1, 1]} : vector<12x128xf32> to vector<1x128xf32>
    %29 = vector.extract_strided_slice %24 {offsets = [4, 0], sizes = [1, 128], strides = [1, 1]} : vector<12x128xf32> to vector<1x128xf32>
    %30 = vector.extract_strided_slice %24 {offsets = [5, 0], sizes = [1, 128], strides = [1, 1]} : vector<12x128xf32> to vector<1x128xf32>
    %31 = vector.extract_strided_slice %24 {offsets = [6, 0], sizes = [1, 128], strides = [1, 1]} : vector<12x128xf32> to vector<1x128xf32>
    %32 = vector.extract_strided_slice %24 {offsets = [7, 0], sizes = [1, 128], strides = [1, 1]} : vector<12x128xf32> to vector<1x128xf32>
    %33 = vector.extract_strided_slice %24 {offsets = [8, 0], sizes = [1, 128], strides = [1, 1]} : vector<12x128xf32> to vector<1x128xf32>
    %34 = vector.extract_strided_slice %24 {offsets = [9, 0], sizes = [1, 128], strides = [1, 1]} : vector<12x128xf32> to vector<1x128xf32>
    %35 = vector.extract_strided_slice %24 {offsets = [10, 0], sizes = [1, 128], strides = [1, 1]} : vector<12x128xf32> to vector<1x128xf32>
    %36 = vector.extract_strided_slice %24 {offsets = [11, 0], sizes = [1, 128], strides = [1, 1]} : vector<12x128xf32> to vector<1x128xf32>
    %37 = arith.subf %25, %28 : vector<1x128xf32>
    %38 = arith.subf %26, %29 : vector<1x128xf32>
    %39 = arith.subf %27, %30 : vector<1x128xf32>
    %40 = arith.mulf %37, %37 : vector<1x128xf32>
    %41 = arith.mulf %38, %38 : vector<1x128xf32>
    %42 = arith.addf %40, %41 : vector<1x128xf32>
    %43 = arith.mulf %39, %39 : vector<1x128xf32>
    %44 = arith.addf %42, %43 : vector<1x128xf32>
    %45 = math.sqrt %44 : vector<1x128xf32>
    %46 = arith.subf %25, %31 : vector<1x128xf32>
    %47 = arith.subf %26, %32 : vector<1x128xf32>
    %48 = arith.subf %27, %33 : vector<1x128xf32>
    %49 = arith.mulf %46, %46 : vector<1x128xf32>
    %50 = arith.mulf %47, %47 : vector<1x128xf32>
    %51 = arith.addf %49, %50 : vector<1x128xf32>
    %52 = arith.mulf %48, %48 : vector<1x128xf32>
    %53 = arith.addf %51, %52 : vector<1x128xf32>
    %54 = math.sqrt %53 : vector<1x128xf32>
    %55 = arith.subf %25, %34 : vector<1x128xf32>
    %56 = arith.subf %26, %35 : vector<1x128xf32>
    %57 = arith.subf %27, %36 : vector<1x128xf32>
    %58 = arith.mulf %55, %55 : vector<1x128xf32>
    %59 = arith.mulf %56, %56 : vector<1x128xf32>
    %60 = arith.addf %58, %59 : vector<1x128xf32>
    %61 = arith.mulf %57, %57 : vector<1x128xf32>
    %62 = arith.addf %60, %61 : vector<1x128xf32>
    %63 = math.sqrt %62 : vector<1x128xf32>
    %64 = arith.subf %28, %31 : vector<1x128xf32>
    %65 = arith.subf %29, %32 : vector<1x128xf32>
    %66 = arith.subf %30, %33 : vector<1x128xf32>
    %67 = arith.mulf %64, %64 : vector<1x128xf32>
    %68 = arith.mulf %65, %65 : vector<1x128xf32>
    %69 = arith.addf %67, %68 : vector<1x128xf32>
    %70 = arith.mulf %66, %66 : vector<1x128xf32>
    %71 = arith.addf %69, %70 : vector<1x128xf32>
    %72 = math.sqrt %71 : vector<1x128xf32>
    %73 = arith.subf %28, %34 : vector<1x128xf32>
    %74 = arith.subf %29, %35 : vector<1x128xf32>
    %75 = arith.subf %30, %36 : vector<1x128xf32>
    %76 = arith.mulf %73, %73 : vector<1x128xf32>
    %77 = arith.mulf %74, %74 : vector<1x128xf32>
    %78 = arith.addf %76, %77 : vector<1x128xf32>
    %79 = arith.mulf %75, %75 : vector<1x128xf32>
    %80 = arith.addf %78, %79 : vector<1x128xf32>
    %81 = math.sqrt %80 : vector<1x128xf32>
    %82 = arith.subf %31, %34 : vector<1x128xf32>
    %83 = arith.subf %32, %35 : vector<1x128xf32>
    %84 = arith.subf %33, %36 : vector<1x128xf32>
    %85 = arith.mulf %82, %82 : vector<1x128xf32>
    %86 = arith.mulf %83, %83 : vector<1x128xf32>
    %87 = arith.addf %85, %86 : vector<1x128xf32>
    %88 = arith.mulf %84, %84 : vector<1x128xf32>
    %89 = arith.addf %87, %88 : vector<1x128xf32>
    %90 = math.sqrt %89 : vector<1x128xf32>
    %91 = tpu.concatenate %45, %54, %63, %72, %81, %90 in 0 : vector<1x128xf32>, vector<1x128xf32>, vector<1x128xf32>, vector<1x128xf32>, vector<1x128xf32>, vector<1x128xf32> -> vector<6x128xf32>
    %c0_4 = arith.constant 0 : index
    %c0_5 = arith.constant 0 : index
    %92 = vector.load %arg3[%c0_4, %c0_5] : memref<6x128xf32, #tpu.memory_space<vmem>>, vector<6x128xf32>
    %93 = arith.subf %92, %91 : vector<6x128xf32>
    %c0_6 = arith.constant 0 : index
    %c0_7 = arith.constant 0 : index
    %94 = vector.load %arg4[%c0_6, %c0_7] : memref<6x128xf32, #tpu.memory_space<vmem>>, vector<6x128xf32>
    tpu.vector_store %arg4[%c0_6, %c0_7], %93 {strides = array<i32>} : memref<6x128xf32, #tpu.memory_space<vmem>>, vector<6x128xf32>,
    return
  }
  func.func @transform_0(%arg0: i32) -> (i32, i32) {
    %c0_i32 = arith.constant 0 : i32
    %c0_i32_0 = arith.constant 0 : i32
    return %c0_i32, %arg0 : i32, i32
  }
  func.func @transform_1(%arg0: i32) -> (i32, i32, i32) {
    %c0_i32 = arith.constant 0 : i32
    %c0_i32_0 = arith.constant 0 : i32
    %c0_i32_1 = arith.constant 0 : i32
    return %c0_i32, %c0_i32_0, %arg0 : i32, i32, i32
  }
  func.func @transform_2(%arg0: i32) -> (i32, i32) {
    %c0_i32 = arith.constant 0 : i32
    %c0_i32_0 = arith.constant 0 : i32
    return %c0_i32, %arg0 : i32, i32
  }
  func.func @transform_3(%arg0: i32) -> (i32, i32) {
    %c0_i32 = arith.constant 0 : i32
    %c0_i32_0 = arith.constant 0 : i32
    return %c0_i32, %arg0 : i32, i32
  }
}

</mosaic_0001>

<bundles_post_ra>
// kernel: tpu_custom_call.1
= control target key start
LH: loop header
LB: loop body
LE: loop exit
PB: predicated region body
PF: predicated region fallthrough
CT: control target
= control target key end

     0   :  { %8 = vsyncpa [#allocation3], 0  ;;  %vm187_vm6 = vcmask 1040384   ;;  %vm189_vm8 = vcmask 1041408   ;;  %vm191_vm10 = vcmask 1042432   ;;  %vm193_vm11 = vcmask 1043456   ;;  %s389_s0 = inlined_call_operand.vmem [shape: f32[4,128], index: 0, kind: input, shape index: {}]   ;;  %s390_s1 = inlined_call_operand.vmem [shape: f32[4,12,128], index: 1, kind: input, shape index: {}]   ;;  %s391_s2 = inlined_call_operand.vmem [shape: f32[6,128], index: 2, kind: input, shape index: {}]   ;;  %s392_s3 = inlined_call_operand.hbm [shape: f32[6,128], index: 3, kind: output, shape index: {}]  }
   0x1   :  { %v15_v0 = vld [vmem:[%s389_s0] sm:$0xf]  ;;  %v17_v2 = vld [vmem:[%s390_s1 + $0x8] sm:$0xf]  ;;  %v18_v3 = vld [vmem:[%s390_s1 + $0x10] sm:$0xff]  ;;  %s255_s30 = smov [#allocation2]  }
   0x2   :  { %v16_v1 = vld [vmem:[%s390_s1] sm:$0xff]  ;;  %v19_v4 = vld [vmem:[%s390_s1 + $0x18] sm:$0xf]  ;;  %v24_v5 = vperm.slane %v15_v0, 0  ;;  %v21_v7 = vld [vmem:[%s390_s1 + $0x28] sm:$0xf] }
   0x3   :  { %v20_v6 = vld [vmem:[%s390_s1 + $0x20] sm:$0xff]  ;;  %v27_v8 = vperm.slane %v15_v0, 1  ;;  %v32_v9 = vperm.slane %v15_v0, 2  ;;  %v22_v10 = vld [vmem:[%s390_s1 + $0x30] sm:$0xff]  ;;  %v23_v11 = vld [vmem:[%s390_s1 + $0x38] sm:$0xf] }
   0x4   :  { %v25_v12 = vmul.f32 %v24_v5, %v16_v1  ;;  %v26_v13 = vmul.f32 %v24_v5, %v17_v2  ;;  %v37_v14 = vperm.slane %v15_v0, 3  ;;  %s205_s4 = sshll.u32 %s255_s30, 4  ;;  %s207_s7 = sshll.u32 %s392_s3, 4  ;;  %s206_s4 = int_to_ptr.vmem [resolvable:$true] %s205_s4  ;;  %s208_s7 = int_to_ptr.hbm [resolvable:$true] %s207_s7 }
   0x5   :  { %v28_v15 = vmul.f32 %v27_v8, %v18_v3  ;;  %v29_v16 = vmul.f32 %v27_v8, %v19_v4  ;;  %v33_v17 = vmul.f32 %v32_v9, %v20_v6  ;;  %v34_v18 = vmul.f32 %v32_v9, %v21_v7 }
   0x6   :  { %v38_v21 = vmul.f32 %v37_v14, %v22_v10  ;;  %v39_v22 = vmul.f32 %v37_v14, %v23_v11 }
   0x7   :  { %v30_v19 = vadd.f32 %v28_v15, %v25_v12  ;;  %v31_v20 = vadd.f32 %v29_v16, %v26_v13 }
   0x9   :  { %v35_v23 = vadd.f32 %v33_v17, %v30_v19  ;;  %v36_v24 = vadd.f32 %v34_v18, %v31_v20 }
   0xb   :  { %v40_v25 = vadd.f32 %v38_v21, %v35_v23  ;;  %v41_v26 = vadd.f32 %v39_v22, %v36_v24 }
   0xd   :  { %v43_v27 = vrot.slane %v40_v25, 3  ;;  %v66_v28 = vrot.slane %v40_v25, 6  ;;  %v70_v29 = vrot.slane %v41_v26, 6  ;;  %v95_v30 = vrot.slane %v41_v26, 1 }
   0xe   :  { %v118_v31 = vrot.slane %v41_v26, 3 }
   0xf   :  { %v45_v32 = vsub.f32 %v40_v25, %v43_v27  ;;  %v68_v33 = vsub.f32 %v40_v25, %v66_v28  ;;  %v72_v34 = vsub.f32 %v40_v25, %v70_v29  ;;  %v97_v35 = vsub.f32 %v40_v25, %v95_v30 }
  0x10   :  { %v120_v36 = vsub.f32 %v40_v25, %v118_v31  ;;  %v154_v42 = vsub.f32 %v41_v26, %v118_v31 }
  0x11   :  { %v46_v37 = vmul.f32 %v45_v32, %v45_v32  ;;  %v73_v38 = vmul.f32 %v68_v33, %v68_v33  ;;  %v78_v39 = vmul.f32 %v72_v34, %v72_v34  ;;  %v98_v40 = vmul.f32 %v97_v35, %v97_v35 }
  0x12   :  { %v121_v41 = vmul.f32 %v120_v36, %v120_v36  ;;  %v158_v56 = vmul.f32 %v154_v42, %v154_v42 }
  0x13   :  { %v48_v43 = vrot.slane %v46_v37, 1  ;;  %v51_v44 = vrot.slane %v46_v37, 2  ;;  %v75_v45 = vrot.slane %v73_v38, 1  ;;  %v80_v46 = vrot.slane %v78_v39, 2 }
  0x14   :  { %v100_v47 = vrot.slane %v98_v40, 1  ;;  %v103_v48 = vrot.slane %v98_v40, 2  ;;  %v123_v49 = vrot.slane %v121_v41, 2  ;;  %v138_v50 = vrot.slane %v78_v39, 1 }
  0x15   :  { %v50_v51 = vadd.f32 %v48_v43, %v46_v37  ;;  %v77_v52 = vadd.f32 %v75_v45, %v73_v38  ;;  %v155_v55 = vrot.slane %v121_v41, 1  ;;  %v160_v63 = vrot.slane %v158_v56, 2 }
  0x16   :  { %v102_v53 = vadd.f32 %v100_v47, %v98_v40  ;;  %v140_v54 = vadd.f32 %v138_v50, %v78_v39 }
  0x17   :  { %v303_v57 = vadd.f32 %v51_v44, %v50_v51  ;;  %v305_v58 = vadd.f32 %v80_v46, %v77_v52  ;;  %v309_v60 = vadd.f32 %v123_v49, %v50_v51  ;;  %v157_v62 = vadd.f32 %v155_v55, %v121_v41 }
  0x18   :  { %v307_v59 = vadd.f32 %v103_v48, %v102_v53  ;;  %v312_v61 = vadd.f32 %v140_v54, %v80_v46 }
  0x19   :  { %217 = vrsqrt.f32 %v303_v57  ;;  %v318_v0 = vadd.f32 %v160_v63, %v157_v62  ;;  %vm61_vm0 = vcmp.eq.f32.partialorder %v303_v57, inf  ;;  %v64_v8 = vand.u32 2147483648, %v303_v57 }
  0x1a   :  { %219 = vrsqrt.f32 %v305_v58  ;;  %vm63_vm1 = vcmp.eq.f32.partialorder %v303_v57, 0.0  ;;  %vm90_vm2 = vcmp.eq.f32.partialorder %v305_v58, inf  ;;  %vm92_vm3 = vcmp.eq.f32.partialorder %v305_v58, 0.0 }
  0x1b   :  { %221 = vrsqrt.f32 %v307_v59  ;;  %v93_v14 = vand.u32 2147483648, %v305_v58  ;;  %vm113_vm4 = vcmp.eq.f32.partialorder %v307_v59, inf  ;;  %vm115_vm5 = vcmp.eq.f32.partialorder %v307_v59, 0.0 }
  0x1c   :  { %223 = vrsqrt.f32 %v309_v60  ;;  %v116_v22 = vand.u32 2147483648, %v307_v59  ;;  %vm133_vm7 = vcmp.eq.f32.partialorder %v309_v60, inf  ;;  %vm135_vm9 = vcmp.eq.f32.partialorder %v309_v60, 0.0 }
  0x1d   :  { %225 = vrsqrt.f32 %v312_v61  ;;  %v136_v32 = vand.u32 2147483648, %v309_v60  ;;  %vm149_vm12 = vcmp.eq.f32.partialorder %v312_v61, inf  ;;  %vm151_vm13 = vcmp.eq.f32.partialorder %v312_v61, 0.0 }
  0x1e   :  { %227 = vrsqrt.f32 %v318_v0  ;;  %v152_v43 = vand.u32 2147483648, %v312_v61  ;;  %vm170_vm14 = vcmp.eq.f32.partialorder %v318_v0, inf  ;;  %vm172_vm15 = vcmp.eq.f32.partialorder %v318_v0, 0.0 }
  0x1f   :  { %v218_v1 = vpop.eup %217 }
  0x20   :  { %v220_v2 = vpop.eup %219  ;;  %v55_v3 = vmul.f32 %v218_v1, %v303_v57 }
  0x21   :  { %v222_v4 = vpop.eup %221  ;;  %v84_v5 = vmul.f32 %v220_v2, %v305_v58 }
  0x22   :  { %v224_v6 = vpop.eup %223  ;;  %v56_v7 = vmul.f32 %v218_v1, %v55_v3  ;;  %v107_v9 = vmul.f32 %v222_v4, %v307_v59 }
  0x23   :  { %v226_v10 = vpop.eup %225  ;;  %v85_v11 = vmul.f32 %v220_v2, %v84_v5  ;;  %v127_v12 = vmul.f32 %v224_v6, %v309_v60 }
  0x24   :  { %v57_v13 = vmul.f32 0.5, %v56_v7  ;;  %v108_v15 = vmul.f32 %v222_v4, %v107_v9  ;;  %v143_v16 = vmul.f32 %v226_v10, %v312_v61  ;;  %v228_v19 = vpop.eup %227 }
  0x25   :  { %v86_v17 = vmul.f32 0.5, %v85_v11  ;;  %v128_v18 = vmul.f32 %v224_v6, %v127_v12  ;;  %v164_v26 = vmul.f32 %v228_v19, %v318_v0 }
  0x26   :  { %v58_v20 = vsub.f32 1.5, %v57_v13  ;;  %v109_v21 = vmul.f32 0.5, %v108_v15  ;;  %v144_v23 = vmul.f32 %v226_v10, %v143_v16 }
  0x27   :  { %v87_v24 = vsub.f32 1.5, %v86_v17  ;;  %v129_v25 = vmul.f32 0.5, %v128_v18  ;;  %v165_v33 = vmul.f32 %v228_v19, %v164_v26 }
  0x28   :  { %v59_v27 = vmul.f32 %v218_v1, %v58_v20  ;;  %v110_v28 = vsub.f32 1.5, %v109_v21  ;;  %v145_v29 = vmul.f32 0.5, %v144_v23 }
  0x29   :  { %v88_v30 = vmul.f32 %v220_v2, %v87_v24  ;;  %v130_v31 = vsub.f32 1.5, %v129_v25  ;;  %v166_v39 = vmul.f32 0.5, %v165_v33 }
  0x2a   :  { %v60_v34 = vmul.f32 %v59_v27, %v303_v57  ;;  %v111_v35 = vmul.f32 %v222_v4, %v110_v28  ;;  %v146_v36 = vsub.f32 1.5, %v145_v29 }
  0x2b   :  { %v89_v37 = vmul.f32 %v88_v30, %v305_v58  ;;  %v131_v38 = vmul.f32 %v224_v6, %v130_v31  ;;  %v167_v46 = vsub.f32 1.5, %v166_v39  ;;  %v197_v6 = vld [vmem:[%s391_s2] sm:$0x3f] }
  0x2c   :  { %v62_v40 = vsel %vm61_vm0, %v303_v57, %v60_v34  ;;  %v112_v41 = vmul.f32 %v111_v35, %v307_v59  ;;  %v147_v42 = vmul.f32 %v226_v10, %v146_v36  ;;  %v173_v57 = vand.u32 2147483648, %v318_v0 }
  0x2d   :  { %v91_v44 = vsel %vm90_vm2, %v305_v58, %v89_v37  ;;  %v132_v45 = vmul.f32 %v131_v38, %v309_v60  ;;  %v65_v47 = vsel %vm63_vm1, %v64_v8, %v62_v40  ;;  %v168_v53 = vmul.f32 %v228_v19, %v167_v46 }
  0x2e   :  { %v94_v48 = vsel %vm92_vm3, %v93_v14, %v91_v44  ;;  %v114_v49 = vsel %vm113_vm4, %v307_v59, %v112_v41  ;;  %v148_v50 = vmul.f32 %v147_v42, %v312_v61  ;;  %vm195_vm0 = vcmask 1044480  }
  0x2f   :  { %v117_v51 = vsel %vm115_vm5, %v116_v22, %v114_v49  ;;  %v134_v52 = vsel %vm133_vm7, %v309_v60, %v132_v45  ;;  %v176_v54 = vrot.slane %v94_v48, 7  ;;  %v169_v62 = vmul.f32 %v168_v53, %v318_v0 }
  0x30   :  { %v137_v55 = vsel %vm135_vm9, %v136_v32, %v134_v52  ;;  %v150_v56 = vsel %vm149_vm12, %v312_v61, %v148_v50  ;;  %v179_v58 = vrot.slane %v117_v51, 6 }
  0x31   :  { %v153_v59 = vsel %vm151_vm13, %v152_v43, %v150_v56  ;;  %v188_v63 = vsel %vm187_vm6, %v65_v47, %v176_v54  ;;  %v171_v2 = vsel %vm170_vm14, %v318_v0, %v169_v62 }
  0x32   :  { %v182_v1 = vrot.slane %v153_v59, 7  ;;  %v190_v60 = vsel %vm189_vm8, %v188_v63, %v179_v58  ;;  %v174_v4 = vsel %vm172_vm15, %v173_v57, %v171_v2 }
  0x33   :  { %v192_v3 = vsel %vm191_vm10, %v190_v60, %v137_v55  ;;  %v185_v61 = vrot.slane %v174_v4, 1 }
  0x34   :  { %v194_v5 = vsel %vm193_vm11, %v192_v3, %v182_v1 }
  0x35   :  { %v196_v7 = vsel %vm195_vm0, %v194_v5, %v185_v61 }
  0x36   :  { %v198_v8 = vsub.f32 %v197_v6, %v196_v7 }
  0x38   :  { %199 = vst [vmem:[#allocation2] sm:$0x3f] %v198_v8 }
  0x39   :  { %210 = dma.vmem_to_hbm [thread:$0]  %s206_s4, 128, %s208_s7, [#allocation3]  }
  0x3a   :  { %253 = dma.done.wait [#allocation3], 128  }
  0x3b   :  { %254 = vsyncadd [#allocation3], 4294967168 }
  0x3c   :  { %215 = vsyncpa [#allocation3], 1 }

</bundles_post_ra>
